<compile_context>
chip_gen: v7x
topology: tpu7x:2x2x1
jax: 0.10.0
libtpu: 0.0.40
codegen_flags: <defaults>
</compile_context>

<pallas_src>
import functools

import jax
import jax.numpy as jnp
from jax import lax
from jax.experimental import pallas as pl
from jax.experimental.pallas import tpu as pltpu

LANES = 128
SUBLANES = 8
MAX_TILE_ROWS = 4096      # 4096 x 128 f32 = 2 MiB per pipeline buffer
CHUNK_ROWS_MAX = 64       # 64 x 128 f32 = 8 vregs -> 8 independent f32 chains
N_CORES = 2               # shard row tiles over v7x's two TensorCores


def _round_up(x, m):
    return ((x + m - 1) // m) * m


def _rmse_partial_kernel(yhat_ref, y_ref, out_ref, acc_ref, *,
                         rows, tile_rows, chunk_rows, num_chunks,
                         steps_per_core, n_full_blocks, mask_possible):
    c = pl.program_id(0)                       # parallel (core) axis
    j = pl.program_id(1)                       # sequential row-tile axis
    block = c * steps_per_core + j             # global row-tile index

    @pl.when(j == 0)
    def _():
        acc_ref[...] = jnp.zeros_like(acc_ref)

    unroll = 2 if (num_chunks > 1 and num_chunks % 2 == 0) else 1

    def accumulate(masked):
        if masked:
            # Hoisted out of the loop (JAX doesn't CSE broadcast_in_dim).
            row_iota = lax.broadcasted_iota(jnp.int32, (chunk_rows, LANES), 0)
            block_row0 = block * tile_rows

        def body(k, acc):
            r0 = pl.multiple_of(k * chunk_rows, chunk_rows)
            a = yhat_ref[pl.ds(r0, chunk_rows), :].astype(jnp.float32)
            b = y_ref[pl.ds(r0, chunk_rows), :].astype(jnp.float32)
            d = a - b
            dd = d * d
            if masked:
                grow = block_row0 + k * chunk_rows + row_iota
                dd = jnp.where(grow < rows, dd, jnp.float32(0.0))
            return acc + dd

        acc_ref[...] = lax.fori_loop(0, num_chunks, body, acc_ref[...],
                                     unroll=unroll)

    if mask_possible:
        @pl.when(block < n_full_blocks)
        def _():
            accumulate(masked=False)

        @pl.when(block >= n_full_blocks)
        def _():
            accumulate(masked=True)
    else:
        accumulate(masked=False)

    @pl.when(j == pl.num_programs(1) - 1)
    def _():
        # Single cross-lane / cross-sublane reduction per core, once at the end.
        out_ref[0, 0] = jnp.sum(acc_ref[...])


def rmse_loss(yhat, y, eps=1e-06):
    assert yhat.shape == y.shape, "yhat and y must have the same shape"
    n_true = 1
    for s in yhat.shape:
        n_true *= s

    # Flatten (layout-preserving for contiguous inputs); keep native dtype.
    yhat_f = jnp.ravel(yhat)
    y_f = jnp.ravel(y)

    # TODO(synk): for N % 128 != 0 this pad is a full extra HBM pass over both
    # inputs; a 1-D-block kernel with an in-kernel lane mask would avoid it
    # but relies on 1-D vector layouts. Conv-PINN element counts are lane
    # aligned, so keep the simple, portable path (zeros add 0 to the SSE).
    rem = n_true % LANES
    if rem:
        yhat_f = jnp.pad(yhat_f, (0, LANES - rem))
        y_f = jnp.pad(y_f, (0, LANES - rem))

    rows = yhat_f.shape[0] // LANES
    yhat2d = yhat_f.reshape(rows, LANES)
    y2d = y_f.reshape(rows, LANES)

    # Chunk (fori_loop step) and tile (grid step) sizes: tile is always a
    # multiple of the chunk, chunk a multiple of the sublane count.
    rows8 = _round_up(rows, SUBLANES)
    chunk_rows = min(CHUNK_ROWS_MAX, rows8)
    tile_rows = min(MAX_TILE_ROWS, _round_up(rows8, chunk_rows))
    num_chunks = tile_rows // chunk_rows

    total_steps = pl.cdiv(rows, tile_rows)
    n_cores = N_CORES if total_steps >= N_CORES else 1
    steps_per_core = pl.cdiv(total_steps, n_cores)
    n_full_blocks = rows // tile_rows                  # fully-valid tiles
    mask_possible = (n_cores * steps_per_core) > n_full_blocks

    kernel = functools.partial(
        _rmse_partial_kernel,
        rows=rows,
        tile_rows=tile_rows,
        chunk_rows=chunk_rows,
        num_chunks=num_chunks,
        steps_per_core=steps_per_core,
        n_full_blocks=n_full_blocks,
        mask_possible=mask_possible,
    )

    def in_map(c, j):
        # Clamp so a trailing grid point on the second core never issues a
        # fully out-of-range DMA; its contribution is masked to zero anyway.
        return (jnp.minimum(c * steps_per_core + j, total_steps - 1), 0)

    bytes_accessed = (yhat2d.size * yhat2d.dtype.itemsize
                      + y2d.size * y2d.dtype.itemsize + 4 * n_cores)

    partial_sse = pl.pallas_call(
        kernel,
        out_shape=jax.ShapeDtypeStruct((n_cores, 1), jnp.float32),
        grid_spec=pltpu.PrefetchScalarGridSpec(
            num_scalar_prefetch=0,
            grid=(n_cores, steps_per_core),
            in_specs=[
                pl.BlockSpec((tile_rows, LANES), in_map),
                pl.BlockSpec((tile_rows, LANES), in_map),
            ],
            out_specs=pl.BlockSpec(
                (1, 1), lambda c, j: (c, 0), memory_space=pltpu.SMEM
            ),
            scratch_shapes=[pltpu.VMEM((chunk_rows, LANES), jnp.float32)],
        ),
        compiler_params=pltpu.CompilerParams(
            dimension_semantics=("parallel", "arbitrary"),
        ),
        cost_estimate=pl.CostEstimate(
            flops=3 * n_true,
            transcendentals=0,
            bytes_accessed=bytes_accessed,
        ),
    )(yhat2d, y2d)

    # Tiny epilogue: combine per-core partial SSEs, mean, add eps, sqrt.
    sse = jnp.sum(partial_sse)
    return jnp.sqrt(sse / jnp.float32(n_true) + jnp.float32(eps))


if __name__ == "__main__":
    key = jax.random.PRNGKey(0)
    k1, k2 = jax.random.split(key)

    # Small shapes consistent with a conv-PINN prediction/target pair (NCHW).
    shape = (2, 4, 16, 16)
    yhat = jax.random.normal(k1, shape, dtype=jnp.float32)
    y = jax.random.normal(k2, shape, dtype=jnp.float32)

    loss = rmse_loss(yhat, y)
    jax.block_until_ready(loss)

    # Reference check (plain JAX, same math as torch.sqrt(mse + eps)).
    ref = jnp.sqrt(jnp.mean((yhat - y) ** 2) + 1e-06)
    assert jnp.allclose(loss, ref, rtol=1e-5, atol=1e-6), (loss, ref)

    print("KERNEL_OK")
</pallas_src>

<mosaic_0001>
module attributes {stable_mosaic.version = 11 : i64} {
  func.func @_rmse_partial_kernel(%arg0: i32, %arg1: i32, %arg2: memref<16x128xf32, #tpu.memory_space<vmem>>, %arg3: memref<16x128xf32, #tpu.memory_space<vmem>>, %arg4: memref<1x1xf32, #tpu.memory_space<smem>>, %arg5: memref<16x128xf32, #tpu.memory_space<vmem>>) attributes {dimension_semantics = [#tpu.dimension_semantics<parallel>, #tpu.dimension_semantics<arbitrary>], iteration_bounds = array<i64: 1, 1>, scalar_prefetch = 0 : i64, scratch_operands = 1 : i64, tpu.core_type = #tpu.core_type<tc>, window_params = [{transform_indices = @transform_0, window_bounds = array<i64: 16, 128>}, {transform_indices = @transform_1, window_bounds = array<i64: 16, 128>}, {transform_indices = @transform_2, window_bounds = array<i64: 1, 1>}]} {
    %c0_i32 = arith.constant 0 : i32
    %0 = arith.cmpi eq, %arg1, %c0_i32 : i32
    %1 = arith.extui %0 : i1 to i32
    %c0_i32_0 = arith.constant 0 : i32
    %2 = arith.cmpi ne, %1, %c0_i32_0 : i32
    scf.if %2 {
      %cst = arith.constant 0.000000e+00 : f32
      %17 = vector.broadcast %cst : f32 to vector<16x128xf32>
      %c0_9 = arith.constant 0 : index
      %c0_10 = arith.constant 0 : index
      %18 = vector.load %arg5[%c0_9, %c0_10] : memref<16x128xf32, #tpu.memory_space<vmem>>, vector<16x128xf32>
      tpu.vector_store %arg5[%c0_9, %c0_10], %17 {strides = array<i32>} : memref<16x128xf32, #tpu.memory_space<vmem>>, vector<16x128xf32>,
    } else {
    }
    %c0 = arith.constant 0 : index
    %c0_1 = arith.constant 0 : index
    %3 = vector.load %arg5[%c0, %c0_1] : memref<16x128xf32, #tpu.memory_space<vmem>>, vector<16x128xf32>
    %c0_i32_2 = arith.constant 0 : i32
    %c16_i32 = arith.constant 16 : i32
    %4 = arith.muli %c0_i32_2, %c16_i32 : i32
    %5 = tpu.assume_multiple %4, 16 : i32
    %6 = arith.index_cast %5 : i32 to index
    %c0_3 = arith.constant 0 : index
    %7 = vector.load %arg2[%6, %c0_3] : memref<16x128xf32, #tpu.memory_space<vmem>>, vector<16x128xf32>
    %8 = arith.index_cast %5 : i32 to index
    %c0_4 = arith.constant 0 : index
    %9 = vector.load %arg3[%8, %c0_4] : memref<16x128xf32, #tpu.memory_space<vmem>>, vector<16x128xf32>
    %10 = arith.subf %7, %9 : vector<16x128xf32>
    %11 = arith.mulf %10, %10 : vector<16x128xf32>
    %12 = arith.addf %3, %11 : vector<16x128xf32>
    %c1_i32 = arith.constant 1 : i32
    %c0_5 = arith.constant 0 : index
    %c0_6 = arith.constant 0 : index
    %13 = vector.load %arg5[%c0_5, %c0_6] : memref<16x128xf32, #tpu.memory_space<vmem>>, vector<16x128xf32>
    tpu.vector_store %arg5[%c0_5, %c0_6], %12 {strides = array<i32>} : memref<16x128xf32, #tpu.memory_space<vmem>>, vector<16x128xf32>,
    %c0_i32_7 = arith.constant 0 : i32
    %14 = arith.cmpi eq, %arg1, %c0_i32_7 : i32
    %15 = arith.extui %14 : i1 to i32
    %c0_i32_8 = arith.constant 0 : i32
    %16 = arith.cmpi ne, %15, %c0_i32_8 : i32
    scf.if %16 {
      %c0_9 = arith.constant 0 : index
      %c0_10 = arith.constant 0 : index
      %17 = vector.load %arg5[%c0_9, %c0_10] : memref<16x128xf32, #tpu.memory_space<vmem>>, vector<16x128xf32>
      %18 = vector.shape_cast %17 : vector<16x128xf32> to vector<1x16x128xf32>
      %cst = arith.constant dense<0.000000e+00> : vector<1xf32>
      %19 = vector.multi_reduction <add>, %18, %cst [1, 2] : vector<1x16x128xf32> to vector<1xf32>
      %20 = vector.shape_cast %19 : vector<1xf32> to vector<1x1x1xf32>
      %21 = vector.extract %20[0, 0, 0] : f32 from vector<1x1x1xf32>
      %c0_11 = arith.constant 0 : index
      %c0_12 = arith.constant 0 : index
      %22 = memref.load %arg4[%c0_11, %c0_12] : memref<1x1xf32, #tpu.memory_space<smem>>
      memref.store %21, %arg4[%c0_11, %c0_12] : memref<1x1xf32, #tpu.memory_space<smem>>
    } else {
    }
    return
  }
  func.func @transform_0(%arg0: i32, %arg1: i32) -> (i32, i32) {
    %c1_i32 = arith.constant 1 : i32
    %0 = arith.muli %arg0, %c1_i32 : i32
    %1 = arith.addi %0, %arg1 : i32
    %c0_i32 = arith.constant 0 : i32
    %2 = arith.minsi %1, %c0_i32 : i32
    %c0_i32_0 = arith.constant 0 : i32
    %c0_i32_1 = arith.constant 0 : i32
    return %2, %c0_i32_0 : i32, i32
  }
  func.func @transform_1(%arg0: i32, %arg1: i32) -> (i32, i32) {
    %c1_i32 = arith.constant 1 : i32
    %0 = arith.muli %arg0, %c1_i32 : i32
    %1 = arith.addi %0, %arg1 : i32
    %c0_i32 = arith.constant 0 : i32
    %2 = arith.minsi %1, %c0_i32 : i32
    %c0_i32_0 = arith.constant 0 : i32
    %c0_i32_1 = arith.constant 0 : i32
    return %2, %c0_i32_0 : i32, i32
  }
  func.func @transform_2(%arg0: i32, %arg1: i32) -> (i32, i32) {
    %c0_i32 = arith.constant 0 : i32
    %c0_i32_0 = arith.constant 0 : i32
    return %arg0, %c0_i32 : i32, i32
  }
}

</mosaic_0001>

<bundles_post_ra>
// kernel: tpu_custom_call.1
= control target key start
LH: loop header
LB: loop body
LE: loop exit
PB: predicated region body
PF: predicated region fallthrough
CT: control target
= control target key end

     0   :  { %7 = vsyncpa [#allocation4], 0  ;;  %s239_s0 = inlined_call_operand.hbm [shape: f32[16,128], index: 0, kind: input, shape index: {}]   ;;  %s240_s1 = inlined_call_operand.hbm [shape: f32[16,128], index: 1, kind: input, shape index: {}]   ;;  %s241_s2 = inlined_call_operand.hbm [shape: f32[1,1], index: 2, kind: output, shape index: {}]  }
   0x1   :  { %8 = vsyncpa [#allocation7], 0 }
   0x2   :  { %9 = vsyncpa [#allocation5], 0  ;;  %s183_s9 = smov [#allocation3]   ;;  %s123_s13 = scalar_lea.hbm %s239_s0, 256 }
   0x3   :  { %s21_s10 = sshll.u32 %s183_s9, 4  ;;  %p124_p0 = scmp.ne.s32.totalorder %s239_s0, %s123_s13  ;;  %s22_s10 = int_to_ptr.vmem [resolvable:$true] %s21_s10 }
   0x4   :  { %p127_p1 = scmp.lt.u32.totalorder %s123_s13, %s239_s0 }
   0x6   :  { %p129_p2 = pnand %p127_p1, %p124_p0 }
   0x8   :  { %132 = shalt.err (!%p129_p2)
}
   0x9   :  { %s133_s18 = scalar_lea.vmem %s22_s10, 256  ;;  %p138_p4 = scmp.lt.s32.totalorder %s22_s10, %s22_s10 }
   0xa   :  { %p134_p3 = scmp.ne.s32.totalorder %s22_s10, %s133_s18  ;;  %p139_p5 = scmp.lt.s32.totalorder %s133_s18, %s133_s18 }
   0xc   :  { %p140_p6 = por %p139_p5, %p138_p4 }
   0xe   :  { %p141_p7 = pnand %p140_p6, %p134_p3 }
  0x10   :  { %144 = shalt.err (!%p141_p7)
}
  0x11   :  { %s184_s19 = smov 128   ;;  %s185_s20 = smov 8  }
  0x12   :  { %27 = dma.hbm_to_vmem [thread:$0]  %s239_s0, 256, %s22_s10, [#allocation4], %s184_s19, %s184_s19, %s185_s20  }
  0x13   :  { %s186_s23 = smov [#allocation6]   ;;  %s145_s27 = scalar_lea.hbm %s240_s1, 256 }
  0x14   :  { %s39_s24 = sshll.u32 %s186_s23, 4  ;;  %p146_p8 = scmp.ne.s32.totalorder %s240_s1, %s145_s27  ;;  %s40_s24 = int_to_ptr.vmem [resolvable:$true] %s39_s24 }
  0x15   :  { %p149_p9 = scmp.lt.u32.totalorder %s145_s27, %s240_s1 }
  0x17   :  { %p151_p10 = pnand %p149_p9, %p146_p8 }
  0x19   :  { %154 = shalt.err (!%p151_p10)
}
  0x1a   :  { %s155_s4 = scalar_lea.vmem %s40_s24, 256  ;;  %p160_p12 = scmp.lt.s32.totalorder %s40_s24, %s40_s24 }
  0x1b   :  { %p156_p11 = scmp.ne.s32.totalorder %s40_s24, %s155_s4  ;;  %p161_p13 = scmp.lt.s32.totalorder %s155_s4, %s155_s4 }
  0x1d   :  { %p162_p0 = por %p161_p13, %p160_p12 }
  0x1f   :  { %p163_p1 = pnand %p162_p0, %p156_p11 }
  0x21   :  { %166 = shalt.err (!%p163_p1)
}
  0x22   :  { %45 = dma.hbm_to_vmem [thread:$0]  %s240_s1, 256, %s40_s24, [#allocation7], %s184_s19, %s184_s19, %s185_s20  }
  0x23   :  { %177 = dma.done.wait [#allocation4], 256  }
  0x24   :  { %178 = vsyncadd [#allocation4], 4294967040 }
  0x25   :  { %179 = dma.done.wait [#allocation7], 256  }
  0x26   :  { %180 = vsyncadd [#allocation7], 4294967040  ;;  %v68_v0 = vld [vmem:[#allocation3] sm:$0xff]  ;;  %v69_v1 = vld [vmem:[#allocation3 + $0x8] sm:$0xff]  ;;  %s167_s8 = scalar_lea.hbm %s241_s2, 16 }
  0x27   :  { %v70_v2 = vld [vmem:[#allocation6] sm:$0xff]  ;;  %v71_v3 = vld [vmem:[#allocation6 + $0x8] sm:$0xff]  ;;  %p168_p2 = scmp.ne.s32.totalorder %s241_s2, %s167_s8  ;;  %p171_p3 = scmp.lt.u32.totalorder %s167_s8, %s241_s2 }
  0x28   :  { %v72_v4 = vsub.f32 %v68_v0, %v70_v2  ;;  %v73_v5 = vsub.f32 %v69_v1, %v71_v3 }
  0x29   :  { %p173_p4 = pnand %p171_p3, %p168_p2 }
  0x2a   :  { %v74_v6 = vmul.f32 %v72_v4, %v72_v4  ;;  %v75_v7 = vmul.f32 %v73_v5, %v73_v5 }
  0x2c   :  { %v85_v8 = vadd.f32 %v75_v7, %v74_v6 }
  0x2e   :  { %86 = vadd.xlane.f32.xlu0 %v85_v8 }
  0xbb   :  { %v87_v9 = vpop.xlane.xlu0 %86 }
  0xbc   :  { %v88_v10 = vrot.slane %v87_v9, 4 }
  0xbe   :  { %v89_v11 = vadd.f32 %v88_v10, %v87_v9 }
  0xc0   :  { %v90_v12 = vrot.slane %v89_v11, 2 }
  0xc2   :  { %v91_v13 = vadd.f32 %v90_v12, %v89_v11 }
  0xc4   :  { %v92_v14 = vrot.slane %v91_v13, 1 }
  0xc6   :  { %v93_v15 = vadd.f32 %v92_v14, %v91_v13 }
  0xc8   :  { %116 = vpush %v93_v15 }
  0xf9   :  { %s117_s1 = spop %116 }
  0xfa   :  { %96 = sst [smem:[#allocation8]] %s117_s1 }
  0xfb   :  { %176 = shalt.err (!%p173_p4)
}
  0xfc   :  { %s187_s13 = smov [#allocation8]  }
  0xfd   :  { %104 = dma.smem_to_hbm %s187_s13, 16, %s241_s2, [#allocation5]  }
  0xfe   :  { %181 = dma.done.wait [#allocation5], 16  }
  0xff   :  { %182 = vsyncadd [#allocation5], 4294967280 }
 0x100   :  { %108 = sfence }
 0x101   :  { %109 = vsyncpa [#allocation4], 1 }
 0x102   :  { %110 = vsyncpa [#allocation7], 1 }
 0x103   :  { %111 = vsyncpa [#allocation5], 1 }

</bundles_post_ra>
